<compile_context>
chip_gen: v7x
topology: tpu7x:2x2x1
jax: 0.10.0
libtpu: 0.0.40
codegen_flags: <defaults>
</compile_context>

<pallas_src>
import functools

import jax
import jax.numpy as jnp
from jax import lax
from jax.experimental import pallas as pl
from jax.experimental.pallas import tpu as pltpu


def _round_up(x, m):
    return ((x + m - 1) // m) * m


def _conv_bn_lrelu_kernel(p_ref, w_ref, b_ref, o_ref, *, neg_slope):
    """Fused im2col-matmul + folded-BN bias + LeakyReLU.

    p_ref: (1, K, St)    im2col patches, spatial on the lane axis
    w_ref: (Cout, K)     BN-scale-folded conv weight (grid-resident block)
    b_ref: (Cout, 1)     BN-folded bias (grid-resident block, f32)
    o_ref: (1, Cout, St) output tile, spatial on the lane axis
    """
    p = p_ref[0]                                                      # (K, St)
    y = jnp.dot(w_ref[...], p, preferred_element_type=jnp.float32)    # MXU
    y = y + b_ref[...]                                                # folded BatchNorm
    y = jnp.where(y >= 0, y, neg_slope * y)                           # LeakyReLU(0.1)
    o_ref[0] = y.astype(o_ref.dtype)


def conv_bn_forward(x, weight, gamma, beta, running_mean, running_var,
                    *, stride=1, eps=1e-5, neg_slope=0.1, s_tile=1024):
    """Forward of _conv_bn: 3x3 conv (pad=1, no bias) + BN (eval) + LeakyReLU(0.1).

    x: (B, Cin, H, W) NCHW.  Returns (B, Cout, Hout, Wout) NCHW.
    """
    B, Cin, H, W = x.shape
    Cout, _, KH, KW = weight.shape
    Hout = (H + 2 - KH) // stride + 1
    Wout = (W + 2 - KW) // stride + 1
    K = KH * KW * Cin
    S = Hout * Wout

    f32 = jnp.float32
    # Fold eval-mode BatchNorm into the conv weight and a per-Cout bias, once.
    inv_std = lax.rsqrt(running_var.astype(f32) + eps)
    scale = gamma.astype(f32) * inv_std                                # (Cout,)
    bias = (beta.astype(f32) - running_mean.astype(f32) * scale)       # (Cout,)
    w_mat = jnp.transpose(weight.astype(f32), (0, 2, 3, 1)).reshape(Cout, K)
    w_folded = (w_mat * scale[:, None]).astype(x.dtype)  # fed to MXU in x's dtype
    bias = bias.reshape(Cout, 1)                         # epilogue stays f32

    # im2col in NCHW: (B, KH*KW*Cin, Hout*Wout) -- tap order (kh, kw, cin)
    # matches w_mat above.  No NCHW<->NHWC transposes anywhere.
    x_pad = jnp.pad(x, ((0, 0), (0, 0), (1, 1), (1, 1)))
    taps = []
    for kh in range(KH):
        for kw in range(KW):
            taps.append(lax.slice(
                x_pad,
                (0, 0, kh, kw),
                (B, Cin, kh + (Hout - 1) * stride + 1, kw + (Wout - 1) * stride + 1),
                (1, 1, stride, stride)))
    patches = jnp.stack(taps, axis=1).reshape(B, K, S)

    # Lane-dense spatial tiling: multiple of 128, clamped by a VMEM budget
    # (double-buffered input + output tiles), ragged tail handled by padding.
    itemsize = jnp.dtype(x.dtype).itemsize
    bytes_per_col = 2 * (K + Cout) * itemsize
    budget = 16 * 1024 * 1024
    max_cols = max(128, (budget // bytes_per_col) // 128 * 128)
    st = min(max(128, s_tile), _round_up(S, 128), max_cols)
    st = max(128, (st // 128) * 128)
    S_pad = _round_up(S, st)
    if S_pad != S:
        patches = jnp.pad(patches, ((0, 0), (0, 0), (0, S_pad - S)))

    grid = (B, S_pad // st)
    out_flat = pl.pallas_call(
        functools.partial(_conv_bn_lrelu_kernel, neg_slope=neg_slope),
        out_shape=jax.ShapeDtypeStruct((B, Cout, S_pad), x.dtype),
        grid=grid,
        in_specs=[
            pl.BlockSpec((1, K, st), lambda b, j: (b, 0, j)),
            pl.BlockSpec((Cout, K), lambda b, j: (0, 0)),
            pl.BlockSpec((Cout, 1), lambda b, j: (0, 0)),
        ],
        out_specs=pl.BlockSpec((1, Cout, st), lambda b, j: (b, 0, j)),
        compiler_params=pltpu.CompilerParams(
            dimension_semantics=("parallel", "parallel"),
            vmem_limit_bytes=32 * 1024 * 1024),
    )(patches, w_folded, bias)

    return out_flat[:, :, :S].reshape(B, Cout, Hout, Wout)


if __name__ == "__main__":
    key = jax.random.PRNGKey(0)
    k1, k2, k3, k4, k5, k6 = jax.random.split(key, 6)

    B, inp, oup, H, W = 2, 4, 8, 16, 16

    x = jax.random.normal(k1, (B, inp, H, W), jnp.float32)
    weight = 0.1 * jax.random.normal(k2, (oup, inp, 3, 3), jnp.float32)
    gamma = 1.0 + 0.1 * jax.random.normal(k3, (oup,), jnp.float32)
    beta = 0.1 * jax.random.normal(k4, (oup,), jnp.float32)
    running_mean = 0.1 * jax.random.normal(k5, (oup,), jnp.float32)
    running_var = jnp.abs(1.0 + 0.1 * jax.random.normal(k6, (oup,), jnp.float32))

    def reference(x_in, s):
        y = lax.conv_general_dilated(
            x_in, weight, window_strides=(s, s), padding=((1, 1), (1, 1)),
            dimension_numbers=("NCHW", "OIHW", "NCHW"),
            precision=lax.Precision.HIGHEST)
        sc = gamma / jnp.sqrt(running_var + 1e-5)
        y = y * sc[None, :, None, None] + (beta - running_mean * sc)[None, :, None, None]
        return jnp.where(y >= 0, y, 0.1 * y)

    # stride=1 (module default)
    out = conv_bn_forward(x, weight, gamma, beta, running_mean, running_var, stride=1)
    out = jax.block_until_ready(out)
    ref = reference(x, 1)
    assert out.shape == ref.shape == (B, oup, H, W)
    assert jnp.allclose(out, ref, atol=1e-3, rtol=1e-3), float(jnp.max(jnp.abs(out - ref)))

    # stride=2 (also supported by the module)
    out2 = jax.block_until_ready(
        conv_bn_forward(x, weight, gamma, beta, running_mean, running_var, stride=2))
    ref2 = reference(x, 2)
    assert out2.shape == ref2.shape == (B, oup, H // 2, W // 2)
    assert jnp.allclose(out2, ref2, atol=1e-3, rtol=1e-3), float(jnp.max(jnp.abs(out2 - ref2)))

    print("KERNEL_OK")
</pallas_src>

<mosaic_0001>
module attributes {stable_mosaic.version = 11 : i64} {
  func.func @_conv_bn_lrelu_kernel(%arg0: i32, %arg1: i32, %arg2: memref<1x36x256xf32, #tpu.memory_space<vmem>>, %arg3: memref<8x36xf32, #tpu.memory_space<vmem>>, %arg4: memref<8x1xf32, #tpu.memory_space<vmem>>, %arg5: memref<1x8x256xf32, #tpu.memory_space<vmem>>) attributes {dimension_semantics = [#tpu.dimension_semantics<parallel>, #tpu.dimension_semantics<parallel>], iteration_bounds = array<i64: 2, 1>, scalar_prefetch = 0 : i64, scratch_operands = 0 : i64, tpu.core_type = #tpu.core_type<tc>, window_params = [{transform_indices = @transform_0, window_bounds = array<i64: 1, 36, 256>}, {pipeline_mode = #tpu.pipeline_mode<synchronous>, transform_indices = @transform_1, window_bounds = array<i64: 8, 36>}, {pipeline_mode = #tpu.pipeline_mode<synchronous>, transform_indices = @transform_2, window_bounds = array<i64: 8, 1>}, {transform_indices = @transform_3, window_bounds = array<i64: 1, 8, 256>}]} {
    %c0 = arith.constant 0 : index
    %c0_0 = arith.constant 0 : index
    %c0_1 = arith.constant 0 : index
    %0 = vector.load %arg2[%c0, %c0_0, %c0_1] : memref<1x36x256xf32, #tpu.memory_space<vmem>>, vector<1x36x256xf32>
    %1 = vector.shape_cast %0 : vector<1x36x256xf32> to vector<36x256xf32>
    %c0_2 = arith.constant 0 : index
    %c0_3 = arith.constant 0 : index
    %2 = vector.load %arg3[%c0_2, %c0_3] : memref<8x36xf32, #tpu.memory_space<vmem>>, vector<8x36xf32>
    %cst = arith.constant dense<0.000000e+00> : vector<8x256xf32>
    %3 = tpu.matmul %2, %1, %cst {dimension_numbers = #tpu.dot_dimension_numbers<[1], [0], [0], [1], [0, 0, 1, 1], [], []>} : vector<8x36xf32>, vector<36x256xf32>, vector<8x256xf32> -> vector<8x256xf32>
    %c0_4 = arith.constant 0 : index
    %c0_5 = arith.constant 0 : index
    %4 = vector.load %arg4[%c0_4, %c0_5] : memref<8x1xf32, #tpu.memory_space<vmem>>, vector<8x1xf32>
    %5 = vector.broadcast %4 : vector<8x1xf32> to vector<8x256xf32>
    %6 = arith.addf %3, %5 : vector<8x256xf32>
    %cst_6 = arith.constant 0.000000e+00 : f32
    %7 = vector.broadcast %cst_6 : f32 to vector<8x256xf32>
    %8 = arith.cmpf oge, %6, %7 : vector<8x256xf32>
    %cst_7 = arith.constant 1.000000e-01 : f32
    %9 = vector.broadcast %cst_7 : f32 to vector<8x256xf32>
    %10 = arith.mulf %9, %6 : vector<8x256xf32>
    %11 = arith.select %8, %6, %10 : vector<8x256xi1>, vector<8x256xf32>
    %c0_8 = arith.constant 0 : index
    %c0_9 = arith.constant 0 : index
    %c0_10 = arith.constant 0 : index
    %12 = vector.load %arg5[%c0_8, %c0_9, %c0_10] : memref<1x8x256xf32, #tpu.memory_space<vmem>>, vector<1x8x256xf32>
    %13 = vector.shape_cast %12 : vector<1x8x256xf32> to vector<8x256xf32>
    %14 = vector.shape_cast %11 : vector<8x256xf32> to vector<1x8x256xf32>
    tpu.vector_store %arg5[%c0_8, %c0_9, %c0_10], %14 {strides = array<i32>} : memref<1x8x256xf32, #tpu.memory_space<vmem>>, vector<1x8x256xf32>,
    return
  }
  func.func @transform_0(%arg0: i32, %arg1: i32) -> (i32, i32, i32) {
    %c0_i32 = arith.constant 0 : i32
    %c0_i32_0 = arith.constant 0 : i32
    return %arg0, %c0_i32, %arg1 : i32, i32, i32
  }
  func.func @transform_1(%arg0: i32, %arg1: i32) -> (i32, i32) {
    %c0_i32 = arith.constant 0 : i32
    %c0_i32_0 = arith.constant 0 : i32
    %c0_i32_1 = arith.constant 0 : i32
    return %c0_i32, %c0_i32_0 : i32, i32
  }
  func.func @transform_2(%arg0: i32, %arg1: i32) -> (i32, i32) {
    %c0_i32 = arith.constant 0 : i32
    %c0_i32_0 = arith.constant 0 : i32
    %c0_i32_1 = arith.constant 0 : i32
    return %c0_i32, %c0_i32_0 : i32, i32
  }
  func.func @transform_3(%arg0: i32, %arg1: i32) -> (i32, i32, i32) {
    %c0_i32 = arith.constant 0 : i32
    %c0_i32_0 = arith.constant 0 : i32
    return %arg0, %c0_i32, %arg1 : i32, i32, i32
  }
}

</mosaic_0001>

<bundles_post_ra>
// kernel: tpu_custom_call.1
= control target key start
LH: loop header
LB: loop body
LE: loop exit
PB: predicated region body
PF: predicated region fallthrough
CT: control target
= control target key end

     0   :  { %8 = vsyncpa [#allocation3], 0  ;;  %s704_s0 = inlined_call_operand.vmem [shape: f32[2,36,256], index: 0, kind: input, shape index: {}]   ;;  %s705_s1 = inlined_call_operand.vmem [shape: f32[8,36], index: 1, kind: input, shape index: {}]   ;;  %s706_s2 = inlined_call_operand.vmem [shape: f32[8,1], index: 2, kind: input, shape index: {}]   ;;  %s707_s3 = inlined_call_operand.hbm [shape: f32[2,8,256], index: 3, kind: output, shape index: {}]  }
   0x1   :  { %10 = vsyncpa [#allocation3 + $0x1], 0  ;;  %s586_s12 = smov 0   ;;  %s588_s13 = smov 0  }
   0x2   :  { %s590_s14 = smov 0   ;;  %s592_s15 = smov 0  }
   0x3   :  { %s594_s16 = smov 0   ;;  %s596_s17 = smov 0  }
   0x4 LB: > { %s400_s18 = sadd.s32 4294967295, %s561_s17   ;;  %s401_s19 = sadd.s32 4294967294, %s561_s17   ;;  %s561_s17 = sphi %s596_s17, %s16_s17   ;;  %s557_s16 = sphi %s594_s16, %s714_s16   ;;  %s553_s15 = sphi %s592_s15, %s713_s15   ;;  %s549_s14 = sphi %s590_s14, %s712_s14   ;;  %s545_s13 = sphi %s588_s13, %s711_s13   ;;  %s541_s12 = sphi %s586_s12, %s710_s12  }
   0x5   : > { %s28_s20 = sadd.s32 1, %s557_s16  ;;  %s107_s21 = sadd.s32 1, %s549_s14 }
   0x6   : > { %p30_p0 = scmp.ge.s32.totalorder %s28_s20, 2  ;;  %p117_p1 = scmp.ne.s32.totalorder %s549_s14, %s545_s13 }
   0x7   : > { %p118_p2 = scmp.eq.s32.totalorder %s400_s18, 1  ;;  %p123_p3 = scmp.ne.s32.totalorder %s545_s13, %s541_s12 }
   0x8   : > { %s716_s20 = smov (%p30_p0, %s28_s20), 0  ;;  %p124_p5 = scmp.eq.s32.totalorder %s401_s19, 1 }
   0x9   : > { %p626_p4 = por %p118_p2, %p117_p1  ;;  %s102_s23 = ssub.s32 %s557_s16, %s716_s20 }
   0xa   : > { %p404_p6 = scmp.ge.s32.totalorder %s561_s17, 1  ;;  %p105_p7 = scmp.eq.s32.totalorder %s102_s23, 0 }
   0xb   : > { %p633_p8 = por %p124_p5, %p123_p3  ;;  %p161_p9 = scmp.lt.s32.totalorder %s561_s17, 3 }
   0xc   : > { %s639_s25 = scalar_select %p105_p7, %s549_s14, %s107_s21  }
   0xd   : > { %p162_p10 = pnand %p404_p6, %p161_p9 }
   0xe   : > { %p190_p11 = scmp.lt.s32.totalorder (!%p162_p10), %s553_s15, 1  ;;  %v563_v0 = vmov (!%p162_p10), 0.0   ;;  %v564_v1 = vmov (!%p162_p10), 0   ;;  %v211_v2 = vld [vmem:[%s706_s2] sm:$0xff] (!%p162_p10)  ;;  %vm221_vm0 = vcmask (!%p162_p10), 1043456   ;;  %vm217_vm1 = vcmask (!%p162_p10), 293888  }
   0xf   : > { %165 = sbr.rel (%p162_p10) target bundleno = 272 (0x110), region = 32  ;;  %292 = vmatprep.mubr.f32.mxu0 (!%p162_p10), %v563_v0  ;;  %482 = vset.pattern.permute.xlu0 (!%p162_p10), %v564_v1  ;;  %v210_v17 = vld [vmem:[%s705_s1] sm:$0xff] (!%p162_p10)  ;;  %s186_s8 = sand.u32 (!%p162_p10), 1, %s545_s13  }
  0x10   : > { %214 = vperm.xlu0 (!%p162_p10), %482, %v211_v2   ;;  %s405_s9 = sshll.u32 (!%p162_p10), %s186_s8, 4  ;;  %s415_s10 = sshll.u32 (!%p162_p10), %s553_s15, 8 }
  0x11   : > { %s188_s11 = scalar_lea.vmem (!%p162_p10), [#allocation2], %s405_s9  ;;  %s657_s23 = scalar_lea.hbm (!%p162_p10), %s707_s3, %s415_s10 }
  0x12   : > { %s324_s18 = sshll.u32 (!%p162_p10), %s188_s11, 4  ;;  %s565_s27 = smov (!%p162_p10), [#allocation2]   ;;  %s659_s18 = int_to_ptr.vmem [resolvable:$true] %s324_s18 }
  0x13   : > { %s483_s26 = scalar_lea.vmem (!%p162_p10), %s659_s18, 256 }
  0x14   : > { %p484_p12 = scmp.ne.s32.totalorder (!%p162_p10), %s659_s18, %s483_s26 }
  0x16   : > { %s191_s28 = scalar_select %p190_p11, %s553_s15, 1 }
  0x17   : > { %s308_s15 = scalar_lea.sflag [#allocation3], %s186_s8  ;;  %p485_p13 = pnand %p484_p12, %p626_p4 }
  0x18   : > { %s424_s29 = smul.u32 80, %s191_s28  ;;  %s487_s28 = sshll.u32 %s565_s27, 4  ;;  %s488_s28 = int_to_ptr.vmem [resolvable:$false] %s487_s28 }
  0x19   : > { %p486_p0 = pneg %p485_p13  ;;  %p490_p1 = scmp.lt.s32.totalorder %s659_s18, %s488_s28 }
  0x1a   : > { %s197_s5 = scalar_lea.vmem %s704_s0, %s424_s29  ;;  %s489_s29 = scalar_lea.vmem %s488_s28, 512 }
  0x1b   : > { %v201_v3 = vld [vmem:[%s197_s5 + $0x8] sm:$0xff]  ;;  %v203_v4 = vld [vmem:[%s197_s5 + $0x18] sm:$0xff]  ;;  %v200_v5 = vld [vmem:[%s197_s5] sm:$0xff]  ;;  %p491_p2 = scmp.lt.s32.totalorder %s489_s29, %s483_s26 }
  0x1c   : > { %v416_v6 = vpack.c.bf16 %v203_v4, %v201_v3  ;;  %v202_v7 = vld [vmem:[%s197_s5 + $0x10] sm:$0xff]  ;;  %v205_v8 = vld [vmem:[%s197_s5 + $0x28] sm:$0xff]  ;;  %v207_v9 = vld [vmem:[%s197_s5 + $0x38] sm:$0xff] }
  0x1d   : > { %v418_v10 = vpack.c.bf16 %v202_v7, %v200_v5  ;;  %v420_v11 = vpack.c.bf16 %v207_v9, %v205_v8  ;;  %v204_v12 = vld [vmem:[%s197_s5 + $0x20] sm:$0xff]  ;;  %v206_v13 = vld [vmem:[%s197_s5 + $0x30] sm:$0xff]  ;;  %v209_v15 = vld [vmem:[%s197_s5 + $0x48] sm:$0xf]  ;;  %p492_p3 = por %p491_p2, %p490_p1 }
  0x1e   : > { %417 = vmatprep.subr.bf16.mxu0 %v416_v6  ;;  %v422_v14 = vpack.c.bf16 %v206_v13, %v204_v12  ;;  %v208_v16 = vld [vmem:[%s197_s5 + $0x40] sm:$0xf] }
  0x1f   : > { %419 = vmatpush1.bf16.msra.mxu0 %v418_v10  ;;  %p493_p5 = pnand %p492_p3, %p486_p0 }
  0x20   : > { %421 = vmatprep.subr.bf16.mxu0 %v420_v11 }
  0x23   : > { %423 = vmatpush1.bf16.msra.mxu0 %v422_v14 }
  0x24   : > { %407 = vmatprep.subr.msk.mxu0 %vm221_vm0, %v209_v15 }
  0x27   : > { %408 = vmatpush1.msk.msra.mxu0 %vm221_vm0, %v208_v16 }
  0x28   : > { %409 = vmatmul.mubr.msk.f32.vlgmr.msra.gmra.mrb[0].mxu0 %vm217_vm1, %v210_v17 }
  0x8f   : > { %v215_v18 = vpop.permute.xlu0 %214 }
  0xfb   : > { %v294_v19 = vpop.f32.mrb[0].mxu0 }
  0xfc   : > { %v295_v20 = vadd.f32 %v294_v19, %v215_v18  ;;  %v296_v21 = vpop.f32.mrb[1].mxu0 }
  0xfd   : > { %v297_v22 = vadd.f32 %v296_v21, %v215_v18 }
  0xfe   : > { %vm299_vm2 = vcmp.ge.f32.partialorder %v295_v20, 0.0  ;;  %v301_v23 = vmul.f32 0.1, %v295_v20 }
  0xff   : > { %vm300_vm3 = vcmp.ge.f32.partialorder %v297_v22, 0.0  ;;  %v302_v24 = vmul.f32 0.1, %v297_v22 }
 0x100   : > { %v303_v25 = vsel %vm299_vm2, %v295_v20, %v301_v23 }
 0x101   : > { %v304_v26 = vsel %vm300_vm3, %v297_v22, %v302_v24  ;;  %305 = vst [vmem:[%s188_s11] sm:$0xff] %v303_v25 }
 0x102   : > { %306 = vst [vmem:[%s188_s11 + $0x8] sm:$0xff] %v304_v26 }
 0x103   : > { %496 = shalt.err (!%p493_p5)
}
 0x104   : > { %s497_s30 = scalar_lea.hbm %s657_s23, 256  ;;  %s501_s6 = scalar_lea.hbm %s707_s3, 512 }
 0x105   : > { %p498_p6 = scmp.ne.s32.totalorder %s657_s23, %s497_s30  ;;  %p502_p10 = scmp.lt.u32.totalorder %s657_s23, %s707_s3 }
 0x106   : > { %p503_p11 = scmp.lt.u32.totalorder %s501_s6, %s497_s30  ;;  %p505_p13 = scmp.lt.u32.totalorder %s497_s30, %s657_s23 }
 0x107   : > { %p499_p7 = pnand %p498_p6, %p626_p4 }
 0x108   : > { %p504_p12 = por %p503_p11, %p502_p10 }
 0x109   : > { %p500_p9 = pneg %p499_p7 }
 0x10a   : > { %p506_p0 = por %p505_p13, %p504_p12 }
 0x10c   : > { %p507_p1 = pnand %p506_p0, %p500_p9 }
 0x10e   : > { %510 = shalt.err (!%p507_p1)
}
 0x10f   : > { %425 = dma.vmem_to_hbm [thread:$0]  (%p626_p4), %s659_s18, 256, %s657_s23, %s308_s15  }
 0x110 PF: > { %p431_p2 = scmp.ge.s32.totalorder %s561_s17, 2  ;;  %s336_s9 = sand.u32 1, %s541_s12  }
 0x111   : > { %s337_s10 = scalar_lea.sflag [#allocation3], %s336_s9 }
 0x112   : > { %p428_p3 = pnand %p431_p2, %p633_p8 }
 0x114   : > { %536 = dma.done.wait (!%p428_p3), %s337_s10, 256  }
 0x115   : > { %538 = vsyncadd (!%p428_p3), %s337_s10, 4294967040  ;;  %s16_s17 = sadd.s32 1, %s561_s17   ;;  %s710_s12 = smov %s545_s13 }
 0x116   : > { %p13_p5 = scmp.ge.s32.totalorder %s16_s17, 4   ;;  %s711_s13 = smov %s549_s14 }
 0x117   : > { %s712_s14 = smov %s639_s25  ;;  %s713_s15 = smov %s557_s16 }
 0x118   : > { %s714_s16 = smov %s716_s20  ;;  %15 = sbr.rel (!%p13_p5) target bundleno = 4 (0x4), region = 67 }
 0x11f   :  { %342 = vsyncpa [#allocation3], 1 }
 0x120   :  { %344 = vsyncpa [#allocation3 + $0x1], 1 }

</bundles_post_ra>
